<compile_context>
chip_gen: v5e
topology: v5e:2x2
jax: 0.10.0
libtpu: 0.0.40
codegen_flags: <defaults>
</compile_context>

<pallas_src>
import jax
import jax.numpy as jnp
from jax.experimental import pallas as pl
from jax.experimental.pallas import tpu as pltpu


def _mask_apply_kernel(schema_ref, x_ref, emb_ref, out_ref):
    """Elementwise masked-embedding substitution on one (TM, H) row block."""
    mask = schema_ref[...] != 0                      # (TM, 1) -> bool
    emb = emb_ref[...].astype(x_ref.dtype)           # (1, H), VMEM-resident
    # jnp.where broadcasts (TM,1) mask and (1,H) emb against the (TM,H) block.
    out_ref[...] = jnp.where(mask, emb, x_ref[...])


def _choose_block_rows(rows, hidden, itemsize,
                       target_bytes=2 * 1024 * 1024, cap=4096):
    """Pick a row-tile: ~2 MiB per block, multiple of 8, or the full extent."""
    tm = target_bytes // max(1, hidden * itemsize)
    tm = max(8, min(cap, tm))
    tm -= tm % 8
    if rows <= tm:
        return rows                                   # single full-extent block
    return tm


def mask_sequence_forward(inputs, item_ids, masked_item_embedding,
                          padding_idx=0, training=False, testing=False,
                          block_rows=None):
    """JAX/Pallas equivalent of MaskSequence.forward.

    Returns (outputs, mask_schema, masked_targets), mirroring the module's
    forward return value plus the attributes it stores.
    """
    assert item_ids.ndim == 2, "`item_ids` must have 2 dimensions."
    B, S, H = inputs.shape

    # predict_all: shift item ids left by one, pad last position with 0.
    labels = jnp.concatenate(
        [item_ids[:, 1:], jnp.zeros((B, 1), dtype=item_ids.dtype)], axis=-1)
    schema = labels != padding_idx                   # (B, S) bool, tiny VPU op

    if not training and not testing:
        # Inference: apply_mask_to_inputs is a no-op; skip the kernel entirely.
        return inputs, schema, labels

    rows = B * S
    x2 = inputs.reshape(rows, H)                     # free row-major reshape
    schema2 = schema.reshape(rows, 1).astype(jnp.int32)
    emb2 = masked_item_embedding.reshape(1, H)

    tm = block_rows if block_rows is not None else _choose_block_rows(
        rows, H, jnp.dtype(inputs.dtype).itemsize)
    grid = (pl.cdiv(rows, tm),)

    masked = pl.pallas_call(
        _mask_apply_kernel,
        grid=grid,
        out_shape=jax.ShapeDtypeStruct((rows, H), inputs.dtype),
        in_specs=[
            pl.BlockSpec((tm, 1), lambda i: (i, 0)),     # per-row mask
            pl.BlockSpec((tm, H), lambda i: (i, 0)),     # inputs block
            pl.BlockSpec((1, H), lambda i: (0, 0)),      # embedding (resident)
        ],
        out_specs=pl.BlockSpec((tm, H), lambda i: (i, 0)),
        compiler_params=pltpu.CompilerParams(
            dimension_semantics=("parallel",)),          # megacore on v7x
    )(schema2, x2, emb2)

    return masked.reshape(B, S, H), schema, labels


def _reference(inputs, item_ids, masked_item_embedding, padding_idx):
    B = item_ids.shape[0]
    labels = jnp.concatenate(
        [item_ids[:, 1:], jnp.zeros((B, 1), dtype=item_ids.dtype)], axis=-1)
    schema = labels != padding_idx
    out = jnp.where(schema[:, :, None],
                    masked_item_embedding.astype(inputs.dtype), inputs)
    return out, schema, labels


if __name__ == "__main__":
    key = jax.random.PRNGKey(0)
    k_in, k_ids, k_emb, k_in2, k_ids2 = jax.random.split(key, 5)

    # --- small canonical shapes: batch=2, seq=8, hidden=32 ---
    B, S, H = 2, 8, 32
    padding_idx = 0

    inputs = jax.random.normal(k_in, (B, S, H), dtype=jnp.float32)
    item_ids = jax.random.randint(k_ids, (B, S), 0, 10, dtype=jnp.int32)
    masked_item_embedding = 0.001 * jax.random.normal(
        k_emb, (H,), dtype=jnp.float32)

    out, schema, targets = mask_sequence_forward(
        inputs, item_ids, masked_item_embedding,
        padding_idx=padding_idx, training=True, testing=False)
    out = jax.block_until_ready(out)

    out_ref, schema_ref, labels_ref = _reference(
        inputs, item_ids, masked_item_embedding, padding_idx)
    assert jnp.array_equal(schema, schema_ref)
    assert jnp.array_equal(targets, labels_ref)
    assert jnp.allclose(out, out_ref)

    # Inference path: no kernel launch, inputs returned unmodified.
    out_inf, schema_inf, _ = mask_sequence_forward(
        inputs, item_ids, masked_item_embedding,
        padding_idx=padding_idx, training=False, testing=False)
    assert jnp.array_equal(jax.block_until_ready(out_inf), inputs)
    assert jnp.array_equal(schema_inf, schema_ref)

    # --- exercise the tiled / partial-trailing-block path (rows % tm != 0) ---
    B2, S2 = 3, 7                                      # rows = 21, tm = 8 -> grid 3
    inputs2 = jax.random.normal(k_in2, (B2, S2, H), dtype=jnp.float32)
    item_ids2 = jax.random.randint(k_ids2, (B2, S2), 0, 5, dtype=jnp.int32)
    out2, schema2, targets2 = mask_sequence_forward(
        inputs2, item_ids2, masked_item_embedding,
        padding_idx=padding_idx, training=False, testing=True, block_rows=8)
    out2 = jax.block_until_ready(out2)
    out2_ref, schema2_ref, labels2_ref = _reference(
        inputs2, item_ids2, masked_item_embedding, padding_idx)
    assert jnp.array_equal(schema2, schema2_ref)
    assert jnp.array_equal(targets2, labels2_ref)
    assert jnp.allclose(out2, out2_ref)

    print("KERNEL_OK")
</pallas_src>

<mosaic_0001>
module attributes {stable_mosaic.version = 11 : i64} {
  func.func @_mask_apply_kernel(%arg0: i32, %arg1: memref<16x1xi32, #tpu.memory_space<vmem>>, %arg2: memref<16x32xf32, #tpu.memory_space<vmem>>, %arg3: memref<1x32xf32, #tpu.memory_space<vmem>>, %arg4: memref<16x32xf32, #tpu.memory_space<vmem>>) attributes {dimension_semantics = [#tpu.dimension_semantics<parallel>], iteration_bounds = array<i64: 1>, scalar_prefetch = 0 : i64, scratch_operands = 0 : i64, tpu.core_type = #tpu.core_type<tc>, window_params = [{transform_indices = @transform_0, window_bounds = array<i64: 16, 1>}, {transform_indices = @transform_1, window_bounds = array<i64: 16, 32>}, {pipeline_mode = #tpu.pipeline_mode<synchronous>, transform_indices = @transform_2, window_bounds = array<i64: 1, 32>}, {transform_indices = @transform_3, window_bounds = array<i64: 16, 32>}]} {
    %c0 = arith.constant 0 : index
    %c0_0 = arith.constant 0 : index
    %0 = vector.load %arg1[%c0, %c0_0] : memref<16x1xi32, #tpu.memory_space<vmem>>, vector<16x1xi32>
    %c0_i32 = arith.constant 0 : i32
    %1 = vector.broadcast %c0_i32 : i32 to vector<16x1xi32>
    %2 = arith.cmpi ne, %0, %1 : vector<16x1xi32>
    %c0_1 = arith.constant 0 : index
    %c0_2 = arith.constant 0 : index
    %3 = vector.load %arg3[%c0_1, %c0_2] : memref<1x32xf32, #tpu.memory_space<vmem>>, vector<1x32xf32>
    %c0_3 = arith.constant 0 : index
    %c0_4 = arith.constant 0 : index
    %4 = vector.load %arg2[%c0_3, %c0_4] : memref<16x32xf32, #tpu.memory_space<vmem>>, vector<16x32xf32>
    %5 = vector.shape_cast %2 : vector<16x1xi1> to vector<16x1xi1>
    %6 = vector.broadcast %5 : vector<16x1xi1> to vector<16x32xi1>
    %7 = vector.shape_cast %3 : vector<1x32xf32> to vector<1x32xf32>
    %8 = vector.broadcast %7 : vector<1x32xf32> to vector<16x32xf32>
    %9 = arith.select %6, %8, %4 : vector<16x32xi1>, vector<16x32xf32>
    %c0_5 = arith.constant 0 : index
    %c0_6 = arith.constant 0 : index
    %10 = vector.load %arg4[%c0_5, %c0_6] : memref<16x32xf32, #tpu.memory_space<vmem>>, vector<16x32xf32>
    tpu.vector_store %arg4[%c0_5, %c0_6], %9 {strides = array<i32>} : memref<16x32xf32, #tpu.memory_space<vmem>>, vector<16x32xf32>,
    return
  }
  func.func @transform_0(%arg0: i32) -> (i32, i32) {
    %c0_i32 = arith.constant 0 : i32
    %c0_i32_0 = arith.constant 0 : i32
    return %arg0, %c0_i32 : i32, i32
  }
  func.func @transform_1(%arg0: i32) -> (i32, i32) {
    %c0_i32 = arith.constant 0 : i32
    %c0_i32_0 = arith.constant 0 : i32
    return %arg0, %c0_i32 : i32, i32
  }
  func.func @transform_2(%arg0: i32) -> (i32, i32) {
    %c0_i32 = arith.constant 0 : i32
    %c0_i32_0 = arith.constant 0 : i32
    %c0_i32_1 = arith.constant 0 : i32
    return %c0_i32, %c0_i32_0 : i32, i32
  }
  func.func @transform_3(%arg0: i32) -> (i32, i32) {
    %c0_i32 = arith.constant 0 : i32
    %c0_i32_0 = arith.constant 0 : i32
    return %arg0, %c0_i32 : i32, i32
  }
}

</mosaic_0001>

<bundles_post_ra>
// kernel: tpu_custom_call.1
= control target key start
LH: loop header
LB: loop body
LE: loop exit
PB: predicated region body
PF: predicated region fallthrough
CT: control target
= control target key end

     0   :  { %v90_v1 = vmov 0   ;;  %s132_s0 = inlined_call_operand.vmem [shape: s32[16,1], index: 0, kind: input, shape index: {}]   ;;  %s133_s1 = inlined_call_operand.vmem [shape: f32[16,32], index: 1, kind: input, shape index: {}]   ;;  %s134_s2 = inlined_call_operand.vmem [shape: f32[1,32], index: 2, kind: input, shape index: {}]   ;;  %s135_s3 = inlined_call_operand.hbm [shape: f32[16,32], index: 3, kind: output, shape index: {}]  }
   0x1   :  { %v15_v0 = vld [vmem:[%s132_s0] sm:$0xff]  ;;  %62 = vset.pattern.permute.xlu0 %v90_v1  ;;  %v16_v3 = vld [vmem:[%s132_s0 + $0x8] sm:$0xff] }
   0x2   :  { %vm17_vm0 = vcmp.ne.s32.totalorder %v15_v0, 0 }
   0x3   :  { %v22_v2 = vsel %vm17_vm0, 1, %v90_v1 }
   0x4   :  { %8 = vsyncpa [#allocation3], 0  ;;  %25 = vperm.xlu0 %62, %v22_v2   ;;  %vm18_vm1 = vcmp.ne.s32.totalorder %v16_v3, 0  ;;  %v63_v5 = vld [vmem:[%s134_s2] ss:$0 sm:$0xff]  ;;  %vm37_vm2 = vcmask 261120  }
   0x5   :  { %v23_v4 = vsel %vm18_vm1, 1, %v90_v1  ;;  %v20_v6 = vld [vmem:[%s133_s1] sm:$0xff]  ;;  %s91_s20 = smov [#allocation2]   ;;  %s46_s23 = sshll.u32 %s135_s3, 4  ;;  %v21_v9 = vld [vmem:[%s133_s1 + $0x8] sm:$0xff]  ;;  %s47_s23 = int_to_ptr.hbm [resolvable:$true] %s46_s23 }
   0x6   :  { %s44_s0 = sshll.u32 %s91_s20, 4  ;;  %s92_s2 = smov 128   ;;  %s45_s0 = int_to_ptr.vmem [resolvable:$true] %s44_s0 }
   0x7   :  { %s93_s26 = smov 8  }
   0xc   :  { %28 = vperm.xlu0 %62, %v23_v4  }
  0x76   :  { %v26_v7 = vpop.permute.xlu0 %25 }
  0x77   :  { %vm30_vm3 = vcmp.eq.s32.totalorder %v26_v7, 1 }
  0x78   :  { %v35_v8 = vsel %vm30_vm3, %v63_v5, %v20_v6 }
  0x79   :  { %38 = vst.msk [vmem:[#allocation2] sm:$0xff] %vm37_vm2, %v35_v8 }
  0x7e   :  { %v29_v10 = vpop.permute.xlu0 %28 }
  0x7f   :  { %vm31_vm4 = vcmp.eq.s32.totalorder %v29_v10, 1 }
  0x80   :  { %v36_v11 = vsel %vm31_vm4, %v63_v5, %v21_v9 }
  0x81   :  { %39 = vst.msk [vmem:[#allocation2 + $0x8] sm:$0xff] %vm37_vm2, %v36_v11 }
  0x82   :  { %52 = dma.vmem_to_hbm [thread:$0]  %s45_s0, 256, %s47_s23, [#allocation3], %s92_s2, %s92_s2, %s93_s26  }
  0x83   :  { %88 = dma.done.wait [#allocation3], 256  }
  0x84   :  { %89 = vsyncadd [#allocation3], 4294967040 }
  0x85   :  { %57 = vsyncpa [#allocation3], 1 }

</bundles_post_ra>
